<compile_context>
chip_gen: v7x
topology: tpu7x:2x2x1
jax: 0.10.0
libtpu: 0.0.40
codegen_flags: <defaults>
</compile_context>

<pallas_src>
import functools

import jax
import jax.numpy as jnp
from jax import lax
from jax.experimental import pallas as pl
from jax.experimental.pallas import tpu as pltpu

THRESHOLD = 0.5
EPS = 1e-6


def _iou_loss_kernel(y_true_ref, y_pred_ref, out_ref, inter_ref, union_ref, *,
                     batch, num_classes, tile_b, tile_c,
                     mask_rows, mask_cols, threshold, eps):
    bi = pl.program_id(0)   # batch-tile index ("parallel")
    cj = pl.program_id(1)   # class-chunk index ("arbitrary" / reduction)

    @pl.when(cj == 0)
    def _init():
        inter_ref[...] = jnp.zeros_like(inter_ref)
        union_ref[...] = jnp.zeros_like(union_ref)

    y_true = y_true_ref[...].astype(jnp.float32)   # [tile_b, tile_c]
    y_pred = y_pred_ref[...].astype(jnp.float32)   # [tile_b, tile_c]

    pred_hit = y_pred > threshold                  # bool
    if mask_cols:
        # Ragged trailing class chunk: out-of-bounds lanes hold garbage.
        col = cj * tile_c + lax.broadcasted_iota(jnp.int32, (tile_b, tile_c), 1)
        col_ok = col < num_classes
        pred_hit = jnp.logical_and(pred_hit, col_ok)
        y_true = jnp.where(col_ok, y_true, 0.0)

    pred_bin = pred_hit.astype(jnp.float32)

    # intersection += (y_true * (y_pred > th)).sum(dim=1)    (select, not mul)
    inter_ref[...] += jnp.sum(jnp.where(pred_hit, y_true, 0.0),
                              axis=1, keepdims=True)
    # union += clamp(y_true + pred_bin, 0, 1).sum(dim=1)     (exact PyTorch form)
    union_ref[...] += jnp.sum(jnp.clip(y_true + pred_bin, 0.0, 1.0),
                              axis=1, keepdims=True)

    @pl.when(cj == pl.num_programs(1) - 1)
    def _finalize():
        iou = (inter_ref[...] + eps) / (union_ref[...] + eps)   # [tile_b, 1]
        if mask_rows:
            # Ragged trailing batch tile: garbage rows must not bias the mean.
            row = bi * tile_b + lax.broadcasted_iota(jnp.int32, (tile_b, 1), 0)
            iou = jnp.where(row < batch, iou, 0.0)
        tile_sum = jnp.sum(iou)
        # Lane-dense (1, 1, 128) partial-sum slab; only lane 0 carries the value.
        lane = lax.broadcasted_iota(jnp.int32, (1, 1, 128), 2)
        out_ref[...] = jnp.where(lane == 0, tile_sum, 0.0)


def iou_loss(y_true: jax.Array, y_pred: jax.Array, *,
             threshold: float = THRESHOLD, eps: float = EPS,
             block_batch: int | None = None,
             block_classes: int | None = None) -> jax.Array:
    """IoU loss matching PyTorch IoULoss.forward.

    y_true, y_pred: [batch, num_classes].  Any float dtype (bf16 recommended
    for bandwidth); promotion to f32 happens in-vreg inside the kernel.
    Returns a scalar float32 loss.
    """
    assert y_true.shape == y_pred.shape and y_true.ndim == 2
    batch, num_classes = y_true.shape

    elem_bytes = max(y_true.dtype.itemsize, y_pred.dtype.itemsize)
    tile_budget = 4 << 20   # bytes per input tile (x 2 inputs x 2 pipeline bufs)

    # ---- class tiling: full dim when it fits, else 128-multiple chunks ----
    if block_classes is None:
        if 8 * num_classes * elem_bytes <= tile_budget:
            tile_c = num_classes
        else:
            tile_c = (tile_budget // (8 * elem_bytes)) // 128 * 128
    else:
        tile_c = block_classes
    if tile_c >= num_classes:
        tile_c = num_classes            # full dim: always a legal block dim
    else:
        tile_c = max(128, (tile_c // 128) * 128)   # lane-dense chunks
    nc = pl.cdiv(num_classes, tile_c)

    # ---- batch tiling: as many rows as fit the per-tile budget ----
    rows_budget = tile_budget // max(1, tile_c * elem_bytes)
    rows_budget = max(8, min(rows_budget, 65536))
    if block_batch is None:
        block_batch = rows_budget
    if block_batch >= batch:
        tile_b = batch                  # full dim: always legal
    else:
        tile_b = max(8, (block_batch // 8) * 8)
        if tile_b >= batch:
            tile_b = batch
    nb = pl.cdiv(batch, tile_b)

    mask_rows = (batch % tile_b) != 0
    mask_cols = (num_classes % tile_c) != 0

    kernel = functools.partial(
        _iou_loss_kernel,
        batch=batch, num_classes=num_classes, tile_b=tile_b, tile_c=tile_c,
        mask_rows=mask_rows, mask_cols=mask_cols,
        threshold=threshold, eps=eps)

    tile_bytes = tile_b * tile_c * elem_bytes
    scratch_bytes = 2 * tile_b * 4
    vmem_needed = 4 * tile_bytes + scratch_bytes + (8 << 20)
    vmem_limit = int(min(max(vmem_needed, 32 << 20), 48 << 20))  # v7x-safe

    bytes_accessed = (y_true.size * y_true.dtype.itemsize
                      + y_pred.size * y_pred.dtype.itemsize
                      + nb * 128 * 4)

    out = pl.pallas_call(
        kernel,
        out_shape=jax.ShapeDtypeStruct((nb, 1, 128), jnp.float32),
        grid=(nb, nc),
        in_specs=[
            pl.BlockSpec((tile_b, tile_c), lambda i, j: (i, j)),
            pl.BlockSpec((tile_b, tile_c), lambda i, j: (i, j)),
        ],
        out_specs=pl.BlockSpec((1, 1, 128), lambda i, j: (i, 0, 0)),
        scratch_shapes=[pltpu.VMEM((tile_b, 1), jnp.float32),   # intersection
                        pltpu.VMEM((tile_b, 1), jnp.float32)],  # union
        compiler_params=pltpu.CompilerParams(
            dimension_semantics=("parallel", "arbitrary"),
            vmem_limit_bytes=vmem_limit),
        cost_estimate=pl.CostEstimate(
            flops=6 * batch * num_classes,
            transcendentals=0,
            bytes_accessed=int(bytes_accessed)),
    )(y_true, y_pred)

    # Tiny finalization in the wrapper (per-tile partial sums -> mean -> loss).
    return (1.0 - jnp.sum(out) * (1.0 / batch)).astype(jnp.float32)


def iou_loss_ref(y_true, y_pred, threshold=THRESHOLD, eps=EPS):
    """Pure-JAX reference (mirrors the PyTorch module)."""
    y_pred_binary = (y_pred > threshold).astype(jnp.float32)
    intersection = jnp.sum(y_true * y_pred_binary, axis=1)
    union = jnp.sum(jnp.clip(y_true + y_pred_binary, 0.0, 1.0), axis=1)
    iou = (intersection + eps) / (union + eps)
    return 1.0 - jnp.mean(iou)


if __name__ == "__main__":
    key = jax.random.PRNGKey(0)
    k1, k2, k3, k4 = jax.random.split(key, 4)

    # Small shapes consistent with the module: [batch, num_classes].
    batch, num_classes = 8, 32
    y_true = (jax.random.uniform(k1, (batch, num_classes)) > 0.5).astype(jnp.float32)
    y_pred = jax.random.uniform(k2, (batch, num_classes), dtype=jnp.float32)

    loss = jax.block_until_ready(iou_loss(y_true, y_pred))
    ref = jax.block_until_ready(iou_loss_ref(y_true, y_pred))
    assert jnp.allclose(loss, ref, atol=1e-5, rtol=1e-5), (loss, ref)

    # Ragged batch and ragged class chunks — no wrapper padding anywhere.
    batch2, num_classes2 = 37, 200
    y_true2 = (jax.random.uniform(k3, (batch2, num_classes2)) > 0.5).astype(jnp.float32)
    y_pred2 = jax.random.uniform(k4, (batch2, num_classes2), dtype=jnp.float32)
    ref2 = jax.block_until_ready(iou_loss_ref(y_true2, y_pred2))

    for kwargs in ({},                                      # single tile
                   {"block_batch": 16},                     # partial batch tile
                   {"block_classes": 128},                  # partial class chunk
                   {"block_batch": 16, "block_classes": 128}):  # both
        got = jax.block_until_ready(iou_loss(y_true2, y_pred2, **kwargs))
        assert jnp.allclose(got, ref2, atol=1e-5, rtol=1e-5), (kwargs, got, ref2)

    # bf16 inputs: half the HBM bytes; the kernel promotes to f32 in-vreg.
    y_true_bf = y_true2.astype(jnp.bfloat16)
    y_pred_bf = y_pred2.astype(jnp.bfloat16)
    ref_bf = jax.block_until_ready(
        iou_loss_ref(y_true_bf.astype(jnp.float32), y_pred_bf.astype(jnp.float32)))
    got_bf = jax.block_until_ready(iou_loss(y_true_bf, y_pred_bf))
    assert jnp.allclose(got_bf, ref_bf, atol=1e-5, rtol=1e-5), (got_bf, ref_bf)

    print("KERNEL_OK")
</pallas_src>

<mosaic_0001>
module attributes {stable_mosaic.version = 11 : i64} {
  func.func @_iou_loss_kernel(%arg0: i32, %arg1: i32, %arg2: memref<8x32xf32, #tpu.memory_space<vmem>>, %arg3: memref<8x32xf32, #tpu.memory_space<vmem>>, %arg4: memref<1x1x128xf32, #tpu.memory_space<vmem>>, %arg5: memref<8x1xf32, #tpu.memory_space<vmem>>, %arg6: memref<8x1xf32, #tpu.memory_space<vmem>>) attributes {dimension_semantics = [#tpu.dimension_semantics<parallel>, #tpu.dimension_semantics<arbitrary>], iteration_bounds = array<i64: 1, 1>, scalar_prefetch = 0 : i64, scratch_operands = 2 : i64, tpu.core_type = #tpu.core_type<tc>, window_params = [{transform_indices = @transform_0, window_bounds = array<i64: 8, 32>}, {transform_indices = @transform_1, window_bounds = array<i64: 8, 32>}, {transform_indices = @transform_2, window_bounds = array<i64: 1, 1, 128>}]} {
    %c0_i32 = arith.constant 0 : i32
    %0 = arith.cmpi eq, %arg1, %c0_i32 : i32
    %1 = arith.extui %0 : i1 to i32
    %c0_i32_0 = arith.constant 0 : i32
    %2 = arith.cmpi ne, %1, %c0_i32_0 : i32
    scf.if %2 {
      %cst_19 = arith.constant 0.000000e+00 : f32
      %29 = vector.broadcast %cst_19 : f32 to vector<8x1xf32>
      %c0_20 = arith.constant 0 : index
      %c0_21 = arith.constant 0 : index
      %30 = vector.load %arg5[%c0_20, %c0_21] : memref<8x1xf32, #tpu.memory_space<vmem>>, vector<8x1xf32>
      tpu.vector_store %arg5[%c0_20, %c0_21], %29 {strides = array<i32>} : memref<8x1xf32, #tpu.memory_space<vmem>>, vector<8x1xf32>,
      %cst_22 = arith.constant 0.000000e+00 : f32
      %31 = vector.broadcast %cst_22 : f32 to vector<8x1xf32>
      %c0_23 = arith.constant 0 : index
      %c0_24 = arith.constant 0 : index
      %32 = vector.load %arg6[%c0_23, %c0_24] : memref<8x1xf32, #tpu.memory_space<vmem>>, vector<8x1xf32>
      tpu.vector_store %arg6[%c0_23, %c0_24], %31 {strides = array<i32>} : memref<8x1xf32, #tpu.memory_space<vmem>>, vector<8x1xf32>,
    } else {
    }
    %c0 = arith.constant 0 : index
    %c0_1 = arith.constant 0 : index
    %3 = vector.load %arg2[%c0, %c0_1] : memref<8x32xf32, #tpu.memory_space<vmem>>, vector<8x32xf32>
    %c0_2 = arith.constant 0 : index
    %c0_3 = arith.constant 0 : index
    %4 = vector.load %arg3[%c0_2, %c0_3] : memref<8x32xf32, #tpu.memory_space<vmem>>, vector<8x32xf32>
    %cst = arith.constant 5.000000e-01 : f32
    %5 = vector.broadcast %cst : f32 to vector<8x32xf32>
    %6 = arith.cmpf ogt, %4, %5 : vector<8x32xf32>
    %7 = arith.extui %6 : vector<8x32xi1> to vector<8x32xi32>
    %8 = arith.sitofp %7 : vector<8x32xi32> to vector<8x32xf32>
    %c0_4 = arith.constant 0 : index
    %c0_5 = arith.constant 0 : index
    %9 = vector.load %arg5[%c0_4, %c0_5] : memref<8x1xf32, #tpu.memory_space<vmem>>, vector<8x1xf32>
    %cst_6 = arith.constant 0.000000e+00 : f32
    %10 = vector.broadcast %cst_6 : f32 to vector<8x32xf32>
    %11 = arith.select %6, %3, %10 : vector<8x32xi1>, vector<8x32xf32>
    %cst_7 = arith.constant dense<0.000000e+00> : vector<8xf32>
    %12 = vector.multi_reduction <add>, %11, %cst_7 [1] : vector<8x32xf32> to vector<8xf32>
    %13 = vector.shape_cast %12 : vector<8xf32> to vector<8x1xf32>
    %14 = arith.addf %9, %13 : vector<8x1xf32>
    %c0_8 = arith.constant 0 : index
    %c0_9 = arith.constant 0 : index
    %15 = vector.load %arg5[%c0_8, %c0_9] : memref<8x1xf32, #tpu.memory_space<vmem>>, vector<8x1xf32>
    tpu.vector_store %arg5[%c0_8, %c0_9], %14 {strides = array<i32>} : memref<8x1xf32, #tpu.memory_space<vmem>>, vector<8x1xf32>,
    %c0_10 = arith.constant 0 : index
    %c0_11 = arith.constant 0 : index
    %16 = vector.load %arg6[%c0_10, %c0_11] : memref<8x1xf32, #tpu.memory_space<vmem>>, vector<8x1xf32>
    %17 = arith.addf %3, %8 : vector<8x32xf32>
    %cst_12 = arith.constant 0.000000e+00 : f32
    %cst_13 = arith.constant 1.000000e+00 : f32
    %18 = vector.broadcast %cst_12 : f32 to vector<8x32xf32>
    %19 = arith.maximumf %18, %17 : vector<8x32xf32>
    %20 = vector.broadcast %cst_13 : f32 to vector<8x32xf32>
    %21 = arith.minimumf %20, %19 : vector<8x32xf32>
    %cst_14 = arith.constant dense<0.000000e+00> : vector<8xf32>
    %22 = vector.multi_reduction <add>, %21, %cst_14 [1] : vector<8x32xf32> to vector<8xf32>
    %23 = vector.shape_cast %22 : vector<8xf32> to vector<8x1xf32>
    %24 = arith.addf %16, %23 : vector<8x1xf32>
    %c0_15 = arith.constant 0 : index
    %c0_16 = arith.constant 0 : index
    %25 = vector.load %arg6[%c0_15, %c0_16] : memref<8x1xf32, #tpu.memory_space<vmem>>, vector<8x1xf32>
    tpu.vector_store %arg6[%c0_15, %c0_16], %24 {strides = array<i32>} : memref<8x1xf32, #tpu.memory_space<vmem>>, vector<8x1xf32>,
    %c0_i32_17 = arith.constant 0 : i32
    %26 = arith.cmpi eq, %arg1, %c0_i32_17 : i32
    %27 = arith.extui %26 : i1 to i32
    %c0_i32_18 = arith.constant 0 : i32
    %28 = arith.cmpi ne, %27, %c0_i32_18 : i32
    scf.if %28 {
      %c0_19 = arith.constant 0 : index
      %c0_20 = arith.constant 0 : index
      %29 = vector.load %arg5[%c0_19, %c0_20] : memref<8x1xf32, #tpu.memory_space<vmem>>, vector<8x1xf32>
      %cst_21 = arith.constant 9.99999997E-7 : f32
      %30 = vector.broadcast %cst_21 : f32 to vector<8x1xf32>
      %31 = arith.addf %29, %30 : vector<8x1xf32>
      %c0_22 = arith.constant 0 : index
      %c0_23 = arith.constant 0 : index
      %32 = vector.load %arg6[%c0_22, %c0_23] : memref<8x1xf32, #tpu.memory_space<vmem>>, vector<8x1xf32>
      %cst_24 = arith.constant 9.99999997E-7 : f32
      %33 = vector.broadcast %cst_24 : f32 to vector<8x1xf32>
      %34 = arith.addf %32, %33 : vector<8x1xf32>
      %35 = arith.divf %31, %34 : vector<8x1xf32>
      %36 = vector.shape_cast %35 : vector<8x1xf32> to vector<1x8x1xf32>
      %cst_25 = arith.constant dense<0.000000e+00> : vector<1xf32>
      %37 = vector.multi_reduction <add>, %36, %cst_25 [1, 2] : vector<1x8x1xf32> to vector<1xf32>
      %38 = vector.shape_cast %37 : vector<1xf32> to vector<1x1x1xf32>
      %39 = vector.extract %38[0, 0, 0] : f32 from vector<1x1x1xf32>
      %40 = tpu.iota {dimensions = array<i32: 2>} : vector<1x1x128xi32>
      %c0_i32_26 = arith.constant 0 : i32
      %41 = vector.broadcast %c0_i32_26 : i32 to vector<1x1x128xi32>
      %42 = arith.cmpi eq, %40, %41 : vector<1x1x128xi32>
      %cst_27 = arith.constant 0.000000e+00 : f32
      %43 = vector.broadcast %39 : f32 to vector<1x1x128xf32>
      %44 = vector.broadcast %cst_27 : f32 to vector<1x1x128xf32>
      %45 = arith.select %42, %43, %44 : vector<1x1x128xi1>, vector<1x1x128xf32>
      %c0_28 = arith.constant 0 : index
      %c0_29 = arith.constant 0 : index
      %c0_30 = arith.constant 0 : index
      %46 = vector.load %arg4[%c0_28, %c0_29, %c0_30] : memref<1x1x128xf32, #tpu.memory_space<vmem>>, vector<1x1x128xf32>
      tpu.vector_store %arg4[%c0_28, %c0_29, %c0_30], %45 {strides = array<i32>} : memref<1x1x128xf32, #tpu.memory_space<vmem>>, vector<1x1x128xf32>,
    } else {
    }
    return
  }
  func.func @transform_0(%arg0: i32, %arg1: i32) -> (i32, i32) {
    %c0_i32 = arith.constant 0 : i32
    return %arg0, %arg1 : i32, i32
  }
  func.func @transform_1(%arg0: i32, %arg1: i32) -> (i32, i32) {
    %c0_i32 = arith.constant 0 : i32
    return %arg0, %arg1 : i32, i32
  }
  func.func @transform_2(%arg0: i32, %arg1: i32) -> (i32, i32, i32) {
    %c0_i32 = arith.constant 0 : i32
    %c0_i32_0 = arith.constant 0 : i32
    %c0_i32_1 = arith.constant 0 : i32
    return %arg0, %c0_i32, %c0_i32_0 : i32, i32, i32
  }
}

</mosaic_0001>

<bundles_post_ra>
// kernel: tpu_custom_call.1
= control target key start
LH: loop header
LB: loop body
LE: loop exit
PB: predicated region body
PF: predicated region fallthrough
CT: control target
= control target key end

     0   :  { %7 = vsyncpa [#allocation5], 0  ;;  %s248_s0 = inlined_call_operand.hbm [shape: f32[8,32], index: 0, kind: input, shape index: {}]   ;;  %s249_s1 = inlined_call_operand.hbm [shape: f32[8,32], index: 1, kind: input, shape index: {}]   ;;  %s250_s2 = inlined_call_operand.hbm [shape: f32[1,1,128], index: 2, kind: output, shape index: {}]  }
   0x1   :  { %8 = vsyncpa [#allocation8], 0 }
   0x2   :  { %9 = vsyncpa [#allocation6], 0  ;;  %s188_s9 = smov [#allocation4]   ;;  %s189_s11 = smov [#allocation7]  }
   0x3   :  { %s16_s10 = sshll.u32 %s188_s9, 4  ;;  %s26_s12 = sshll.u32 %s189_s11, 4  ;;  %s17_s10 = int_to_ptr.vmem [resolvable:$true] %s16_s10  ;;  %s27_s12 = int_to_ptr.vmem [resolvable:$true] %s26_s12 }
   0x4   :  { %s116_s15 = scalar_lea.hbm %s248_s0, 128 }
   0x5   :  { %p117_p0 = scmp.ne.s32.totalorder %s248_s0, %s116_s15  ;;  %p120_p1 = scmp.lt.u32.totalorder %s116_s15, %s248_s0 }
   0x7   :  { %p122_p2 = pnand %p120_p1, %p117_p0 }
   0x9   :  { %125 = shalt.err (!%p122_p2)
}
   0xa   :  { %s126_s20 = scalar_lea.vmem %s17_s10, 128  ;;  %p131_p4 = scmp.lt.s32.totalorder %s17_s10, %s17_s10 }
   0xb   :  { %p127_p3 = scmp.ne.s32.totalorder %s17_s10, %s126_s20  ;;  %p132_p5 = scmp.lt.s32.totalorder %s126_s20, %s126_s20 }
   0xd   :  { %p133_p6 = por %p132_p5, %p131_p4 }
   0xf   :  { %p134_p7 = pnand %p133_p6, %p127_p3 }
  0x11   :  { %137 = shalt.err (!%p134_p7)
}
  0x12   :  { %19 = dma.hbm_to_vmem [thread:$0]  %s248_s0, 128, %s17_s10, [#allocation5]  }
  0x13   :  { %s138_s25 = scalar_lea.hbm %s249_s1, 128 }
  0x14   :  { %p139_p8 = scmp.ne.s32.totalorder %s249_s1, %s138_s25  ;;  %p142_p9 = scmp.lt.u32.totalorder %s138_s25, %s249_s1 }
  0x16   :  { %p144_p10 = pnand %p142_p9, %p139_p8 }
  0x18   :  { %147 = shalt.err (!%p144_p10)
}
  0x19   :  { %s148_s30 = scalar_lea.vmem %s27_s12, 128  ;;  %p153_p12 = scmp.lt.s32.totalorder %s27_s12, %s27_s12 }
  0x1a   :  { %p149_p11 = scmp.ne.s32.totalorder %s27_s12, %s148_s30  ;;  %p154_p13 = scmp.lt.s32.totalorder %s148_s30, %s148_s30 }
  0x1c   :  { %p155_p0 = por %p154_p13, %p153_p12 }
  0x1e   :  { %p156_p1 = pnand %p155_p0, %p149_p11 }
  0x20   :  { %159 = shalt.err (!%p156_p1)
}
  0x21   :  { %29 = dma.hbm_to_vmem [thread:$0]  %s249_s1, 128, %s27_s12, [#allocation8]  }
  0x22   :  { %182 = dma.done.wait [#allocation5], 128  }
  0x23   :  { %183 = vsyncadd [#allocation5], 4294967168 }
  0x24   :  { %184 = dma.done.wait [#allocation8], 128  }
  0x25   :  { %185 = vsyncadd [#allocation8], 4294967168  ;;  %vm40_vm0 = vcmask 7168   ;;  %v190_v0 = vmov 0.0   ;;  %v43_v1 = vld [vmem:[#allocation4] sm:$0xff]  ;;  %v44_v2 = vld [vmem:[#allocation7] sm:$0xff]  ;;  %v85_v30 = vlaneseq }
  0x26   :  { %42 = vst.msk [vmem:[#allocation3] sm:$0xff] %vm40_vm0, %v190_v0  ;;  %41 = vst.msk [vmem:[#allocation2] sm:$0xff] %vm40_vm0, %v190_v0  ;;  %vm45_vm1 = vcmp.gt.f32.partialorder %v44_v2, 0.5  ;;  %vm50_vm2 = vcmask 261120   ;;  %s191_s1 = smov [#allocation9]  }
  0x27   :  { %v107_v3 = vsel %vm45_vm1, 1.0, %v190_v0  ;;  %v49_v7 = vsel %vm45_vm1, %v43_v1, 0.0  ;;  %v86_v31 = vand.u32 127, %v85_v30  ;;  %s97_s4 = sshll.u32 %s191_s1, 4  ;;  %s98_s4 = int_to_ptr.vmem [resolvable:$true] %s97_s4 }
  0x28   :  { %v58_v4 = vadd.f32 %v107_v3, %v43_v1  ;;  %v51_v9 = vsel %vm50_vm2, %v49_v7, 0.0  ;;  %s160_s6 = scalar_lea.vmem %s98_s4, 16  ;;  %s164_s7 = scalar_lea.vmem %s98_s4, 32 }
  0x29   :  { %vm87_vm3 = vcmp.eq.s32.totalorder %v86_v31, 0  ;;  %p161_p2 = scmp.ne.s32.totalorder %s98_s4, %s160_s6  ;;  %p165_p3 = scmp.lt.s32.totalorder %s98_s4, %s98_s4 }
  0x2a   :  { %v59_v5 = vmax.f32 %v58_v4, 0.0  ;;  %p166_p4 = scmp.lt.s32.totalorder %s164_s7, %s160_s6 }
  0x2c   :  { %v60_v6 = vmin.f32 %v59_v5, 1.0  ;;  %p167_p5 = por %p166_p4, %p165_p3 }
  0x2d   :  { %v57_v10 = vld [vmem:[#allocation3] sm:$0xff]  ;;  %v48_v13 = vld [vmem:[#allocation2] sm:$0xff] }
  0x2e   :  { %v61_v8 = vsel %vm50_vm2, %v60_v6, 0.0  ;;  %p168_p6 = pnand %p167_p5, %p161_p2 }
  0x2f   :  { %62 = vadd.xlane.f32.xlu0 %v61_v8 }
  0x33   :  { %52 = vadd.xlane.f32.xlu0 %v51_v9 }
  0xbc   :  { %v63_v11 = vpop.xlane.xlu0 %62 }
  0xbd   :  { %v64_v12 = vadd.f32 %v63_v11, %v57_v10 }
  0xbf   :  { %65 = vst.msk [vmem:[#allocation3] sm:$0xff] %vm40_vm0, %v64_v12 }
  0xc0   :  { %v53_v14 = vpop.xlane.xlu0 %52 }
  0xc1   :  { %v54_v15 = vadd.f32 %v53_v14, %v48_v13 }
  0xc3   :  { %56 = vst.msk [vmem:[#allocation2] sm:$0xff] %vm40_vm0, %v54_v15 }
  0xc6   :  { %v71_v16 = vld [vmem:[#allocation3] sm:$0xff] }
  0xc7   :  { %v72_v17 = vadd.f32 1e-06, %v71_v16 }
  0xc9   :  { %114 = vrcp.f32 %v72_v17 }
  0xca   :  { %v69_v18 = vld [vmem:[#allocation2] sm:$0xff] }
  0xcb   :  { %v70_v19 = vadd.f32 1e-06, %v69_v18 }
  0xd3   :  { %v115_v20 = vpop.eup %114 }
  0xd4   :  { %v74_v21 = vmul.f32 %v115_v20, %v70_v19 }
  0xd6   :  { %v75_v22 = vsel %vm40_vm0, %v74_v21, 0.0 }
  0xd7   :  { %76 = vadd.xlane.f32.xlu1 %v75_v22 }
 0x164   :  { %v77_v23 = vpop.xlane.xlu1 %76 }
 0x165   :  { %v78_v24 = vrot.slane %v77_v23, 4 }
 0x167   :  { %v79_v25 = vadd.f32 %v78_v24, %v77_v23 }
 0x169   :  { %v80_v26 = vrot.slane %v79_v25, 2 }
 0x16b   :  { %v81_v27 = vadd.f32 %v80_v26, %v79_v25 }
 0x16d   :  { %v82_v28 = vrot.slane %v81_v27, 1 }
 0x16f   :  { %v83_v29 = vadd.f32 %v82_v28, %v81_v27 }
 0x171   :  { %108 = vpush %v83_v29 }
 0x1a2   :  { %s109_s5 = spop %108 }
 0x1a3   :  { %v88_v32 = vstv %s109_s5 }
 0x1a4   :  { %v89_v33 = vsel %vm87_vm3, %v88_v32, 0.0 }
 0x1a5   :  { %90 = vst [vmem:[#allocation9] sm:$0x1] %v89_v33 }
 0x1a6   :  { %171 = shalt.err (!%p168_p6)
}
 0x1a7   :  { %s172_s10 = scalar_lea.hbm %s250_s2, 16 }
 0x1a8   :  { %p173_p7 = scmp.ne.s32.totalorder %s250_s2, %s172_s10  ;;  %p176_p8 = scmp.lt.u32.totalorder %s172_s10, %s250_s2 }
 0x1aa   :  { %p178_p9 = pnand %p176_p8, %p173_p7 }
 0x1ac   :  { %181 = shalt.err (!%p178_p9)
}
 0x1ad   :  { %100 = dma.vmem_to_hbm [thread:$0]  %s98_s4, 16, %s250_s2, [#allocation6]  }
 0x1ae   :  { %186 = dma.done.wait [#allocation6], 16  }
 0x1af   :  { %187 = vsyncadd [#allocation6], 4294967280 }
 0x1b0   :  { %104 = vsyncpa [#allocation5], 1 }
 0x1b1   :  { %105 = vsyncpa [#allocation8], 1 }
 0x1b2   :  { %106 = vsyncpa [#allocation6], 1 }

</bundles_post_ra>
